<compile_context>
chip_gen: v6e
topology: v6e:2x2x1
jax: 0.10.0
libtpu: 0.0.40
codegen_flags: <defaults>
</compile_context>

<pallas_src>
import functools

import jax
import jax.numpy as jnp
from jax.experimental import pallas as pl
from jax.experimental.pallas import tpu as pltpu


def _round_up(x, m):
    return (x + m - 1) // m * m


def _vmem_cap_bytes():
    """Physical VMEM capacity minus pipelining/scheduling headroom."""
    try:
        cap = int(pltpu.get_tpu_info().vmem_capacity_bytes)
    except Exception:
        cap = 64 * 1024 * 1024          # assume the smallest (v7x-sized) VMEM
    return max(cap - 16 * 1024 * 1024, 24 * 1024 * 1024)


# ---------------------------------------------------------------------------
# Kernel 1: weight standardization (runs ONCE, outside the per-batch grid).
# Emits the standardized weight already in mm_dtype, zero-padded to
# (K_pad, C_out_pad) so the main kernel needs no casts / masked weight loads.
# ---------------------------------------------------------------------------
def _ws_kernel(w_ref, o_ref, *, ws_eps, k_real, c_real):
    # w_ref: (9*C_in, C_out); reduce over (kh, kw, ci) per output channel.
    w = w_ref[...].astype(jnp.float32)
    mean = jnp.mean(w, axis=0, keepdims=True)                     # (1, C_out)
    var = jnp.mean((w - mean) ** 2, axis=0, keepdims=True)        # unbiased=False
    w_std = (w - mean) * jax.lax.rsqrt(var + ws_eps)
    k_pad, c_pad = o_ref.shape
    if c_pad > c_real:
        w_std = jnp.concatenate(
            [w_std, jnp.zeros((k_real, c_pad - c_real), jnp.float32)], axis=1)
    if k_pad > k_real:
        w_std = jnp.concatenate(
            [w_std, jnp.zeros((k_pad - k_real, c_pad), jnp.float32)], axis=0)
    o_ref[...] = w_std.astype(o_ref.dtype)


# ---------------------------------------------------------------------------
# Kernel 2: 3x3 conv (pad pre-applied) + fused GroupNorm + SiLU, per batch.
# ---------------------------------------------------------------------------
def _block_kernel(xp_ref, w_ref, b_ref, g_ref, be_ref, o_ref, *scratch,
                  H, W, C_in, C_out, C_pad, K_pad, groups, gn_eps, use_im2col):
    # xp_ref: (H+2, W+2, C_in)  padded NHWC input in mm_dtype (batch squeezed)
    # w_ref:  (K_pad, C_pad)    standardized, zero-padded conv weight (mm_dtype)
    # b_ref/g_ref/be_ref: (1, C_pad) f32, zero-padded
    # o_ref:  (H*W, C_pad)
    HW = H * W

    # ---- 3x3 conv (bias folded into the GroupNorm shift below) ----
    if use_im2col:
        (col_ref,) = scratch
        taps = [xp_ref[dy:dy + H, dx:dx + W, :]
                for dy in range(3) for dx in range(3)]             # 9x (H,W,C_in)
        col = jnp.concatenate(taps, axis=-1).reshape(HW, 9 * C_in)
        if K_pad > 9 * C_in:
            col = jnp.concatenate(
                [col, jnp.zeros((HW, K_pad - 9 * C_in), col.dtype)], axis=-1)
        col_ref[...] = col               # single lane-dense, full-width store
        a = jnp.dot(col_ref[...], w_ref[...],
                    preferred_element_type=jnp.float32)            # (HW, C_pad) f32
    else:
        # Large C_in: 9 shifted matmuls, accumulated in a local value so the
        # compiler can keep partials in the MXU result buffer (MRB on v7x).
        a = None
        for k in range(9):
            dy, dx = divmod(k, 3)
            patch = xp_ref[dy:dy + H, dx:dx + W, :].reshape(HW, C_in)
            tap = w_ref[k * C_in:(k + 1) * C_in, :]
            p = jnp.dot(patch, tap, preferred_element_type=jnp.float32)
            a = p if a is None else a + p

    # ---- fused GroupNorm (two-pass, centered, f32) + affine + SiLU ----
    c_per_g = C_out // groups
    count = float(HW * c_per_g)
    bias = b_ref[...].astype(jnp.float32)                          # (1, C_pad)

    # Pass 1: per-group mean of x = conv + bias (bias added analytically).
    ch_sum = jnp.sum(a, axis=0, keepdims=True) + float(HW) * bias  # (1, C_pad)
    grp_sum = jnp.sum(ch_sum[:, :C_out].reshape(groups, c_per_g),
                      axis=1, keepdims=True)                       # (groups, 1)
    mu = grp_sum / count
    mu_ch = jnp.broadcast_to(mu, (groups, c_per_g)).reshape(1, C_out)
    if C_pad > C_out:
        mu_ch = jnp.concatenate(
            [mu_ch, jnp.zeros((1, C_pad - C_out), jnp.float32)], axis=1)

    # Pass 2: centered variance (numerically robust vs E[x^2]-mu^2).
    d = a - (mu_ch - bias)                                         # = x - mu
    ch_sq = jnp.sum(d * d, axis=0, keepdims=True)
    grp_sq = jnp.sum(ch_sq[:, :C_out].reshape(groups, c_per_g),
                     axis=1, keepdims=True)
    inv = jax.lax.rsqrt(grp_sq / count + gn_eps)                   # (groups, 1)
    inv_ch = jnp.broadcast_to(inv, (groups, c_per_g)).reshape(1, C_out)
    if C_pad > C_out:
        inv_ch = jnp.concatenate(
            [inv_ch, jnp.zeros((1, C_pad - C_out), jnp.float32)], axis=1)

    gamma = g_ref[...].astype(jnp.float32)
    beta = be_ref[...].astype(jnp.float32)
    y = d * (inv_ch * gamma) + beta                                # single VPU pass
    y = y * jax.nn.sigmoid(y)                                      # SiLU (EUP)
    o_ref[...] = y.astype(o_ref.dtype)                             # unmasked store


# ---------------------------------------------------------------------------
# Public wrapper
# ---------------------------------------------------------------------------
def block_forward(x_nchw, weight_oihw, bias, gamma, beta, *, groups,
                  matmul_dtype=None):
    """Pallas Block forward. x_nchw: (N, C_in, H, W) -> (N, C_out, H, W).

    matmul_dtype: set to jnp.bfloat16 on v6e/v7x for MXU-bound sizes
    (GN/SiLU math stays f32; loosen tolerances accordingly).
    """
    N, C_in, H, W = x_nchw.shape
    C_out = weight_oihw.shape[0]
    assert C_out % groups == 0

    ws_eps = 1e-5 if x_nchw.dtype == jnp.float32 else 1e-3
    gn_eps = 1e-5
    mm_dtype = jnp.dtype(matmul_dtype) if matmul_dtype is not None \
        else jnp.dtype(x_nchw.dtype)
    mm_itemsize = mm_dtype.itemsize
    out_itemsize = jnp.dtype(x_nchw.dtype).itemsize

    K = 9 * C_in
    K_pad = _round_up(K, 128)
    C_pad = _round_up(C_out, 128)
    HW = H * W
    cap = _vmem_cap_bytes()

    # --- glue: layout conversions + spatial padding (pad=1 for 3x3 conv) ---
    # Input is cast to mm_dtype ONCE here (halves input DMA when bf16), not
    # per-tap inside the kernel.
    x_nhwc = jnp.transpose(x_nchw, (0, 2, 3, 1))                   # (N,H,W,C_in)
    xp = jnp.pad(x_nhwc, ((0, 0), (1, 1), (1, 1), (0, 0))).astype(mm_dtype)
    w_flat = jnp.transpose(weight_oihw, (2, 3, 1, 0)).reshape(K, C_out)
    b2 = jnp.pad(bias.astype(jnp.float32).reshape(1, C_out),
                 ((0, 0), (0, C_pad - C_out)))
    g2 = jnp.pad(gamma.astype(jnp.float32).reshape(1, C_out),
                 ((0, 0), (0, C_pad - C_out)))
    be2 = jnp.pad(beta.astype(jnp.float32).reshape(1, C_out),
                  ((0, 0), (0, C_pad - C_out)))

    # --- weight standardization: one tiny pallas_call, NOT per grid step ---
    ws_in_b = K * C_out * jnp.dtype(w_flat.dtype).itemsize
    ws_out_b = K_pad * C_pad * mm_itemsize
    ws_kwargs = {}
    ws_need = 3 * ws_in_b + 2 * ws_out_b
    if ws_need > 16 * 1024 * 1024:
        ws_kwargs["compiler_params"] = pltpu.CompilerParams(
            vmem_limit_bytes=int(min(max(ws_need, 32 * 1024 * 1024), cap)))
    w_std = pl.pallas_call(
        functools.partial(_ws_kernel, ws_eps=ws_eps, k_real=K, c_real=C_out),
        out_shape=jax.ShapeDtypeStruct((K_pad, C_pad), mm_dtype),
        **ws_kwargs,
    )(w_flat)

    # --- main kernel configuration ---
    col_b = HW * K_pad * mm_itemsize
    # im2col fills the MXU K dim (256-deep on v6e/v7x); fall back to 9 shifted
    # matmuls when C_in is large or the col buffer would not fit comfortably.
    use_im2col = (C_in <= 256) and (col_b <= max(cap // 3, 8 * 1024 * 1024))

    scratch_shapes = []
    if use_im2col:
        scratch_shapes.append(pltpu.VMEM((HW, K_pad), mm_dtype))

    # VMEM budget: double-buffered in/out blocks; params have constant index
    # maps (resident, NOT double-buffered); explicit scratch; plus the f32
    # conv / centered intermediates the compiler keeps live in VMEM.
    in_block_b = (H + 2) * (W + 2) * C_in * mm_itemsize
    out_block_b = HW * C_pad * out_itemsize
    params_b = K_pad * C_pad * mm_itemsize + 3 * C_pad * 4
    compute_b = 2 * HW * C_pad * 4
    footprint = (2 * (in_block_b + out_block_b) + params_b
                 + (col_b if use_im2col else 0) + compute_b)
    cp_kwargs = {"dimension_semantics": ("parallel",)}
    need = int(footprint * 1.2)
    if need > 16 * 1024 * 1024:
        # Clamp to physical VMEM minus headroom (v7x: 64 MiB/TC).
        cp_kwargs["vmem_limit_bytes"] = int(min(max(need, 32 * 1024 * 1024), cap))

    kernel = functools.partial(
        _block_kernel, H=H, W=W, C_in=C_in, C_out=C_out, C_pad=C_pad,
        K_pad=K_pad, groups=groups, gn_eps=gn_eps, use_im2col=use_im2col)

    out = pl.pallas_call(
        kernel,
        out_shape=jax.ShapeDtypeStruct((N, HW, C_pad), x_nchw.dtype),
        grid_spec=pltpu.PrefetchScalarGridSpec(
            num_scalar_prefetch=0,
            grid=(N,),
            in_specs=[
                pl.BlockSpec((None, H + 2, W + 2, C_in), lambda n: (n, 0, 0, 0)),
                pl.BlockSpec((K_pad, C_pad), lambda n: (0, 0)),
                pl.BlockSpec((1, C_pad), lambda n: (0, 0)),
                pl.BlockSpec((1, C_pad), lambda n: (0, 0)),
                pl.BlockSpec((1, C_pad), lambda n: (0, 0)),
            ],
            out_specs=pl.BlockSpec((None, HW, C_pad), lambda n: (n, 0, 0)),
            scratch_shapes=scratch_shapes,
        ),
        compiler_params=pltpu.CompilerParams(**cp_kwargs),
    )(xp, w_std, b2, g2, be2)

    out_nhwc = out.reshape(N, H, W, C_pad)[..., :C_out]
    return jnp.transpose(out_nhwc, (0, 3, 1, 2))                   # NCHW


# ---------------------------------------------------------------------------
# Pure-JAX reference matching the PyTorch module semantics.
# ---------------------------------------------------------------------------
def block_reference(x_nchw, weight_oihw, bias, gamma, beta, *, groups):
    ws_eps = 1e-5 if x_nchw.dtype == jnp.float32 else 1e-3
    mean = jnp.mean(weight_oihw, axis=(1, 2, 3), keepdims=True)
    var = jnp.mean((weight_oihw - mean) ** 2, axis=(1, 2, 3), keepdims=True)
    w_std = (weight_oihw - mean) * jax.lax.rsqrt(var + ws_eps)
    y = jax.lax.conv_general_dilated(
        x_nchw, w_std, window_strides=(1, 1), padding=((1, 1), (1, 1)),
        dimension_numbers=("NCHW", "OIHW", "NCHW"))
    y = y + bias[None, :, None, None]
    N, O, H, W = y.shape
    yg = y.reshape(N, groups, O // groups, H, W)
    mu = jnp.mean(yg, axis=(2, 3, 4), keepdims=True)
    v = jnp.mean((yg - mu) ** 2, axis=(2, 3, 4), keepdims=True)
    yn = ((yg - mu) * jax.lax.rsqrt(v + 1e-5)).reshape(N, O, H, W)
    yn = yn * gamma[None, :, None, None] + beta[None, :, None, None]
    return yn * jax.nn.sigmoid(yn)


if __name__ == "__main__":
    # Small shapes consistent with Block(dim=4, dim_out=8, groups=2)
    N, C_in, H, W = 2, 4, 16, 16
    C_out, groups = 8, 2

    key = jax.random.PRNGKey(0)
    kx, kw, kb, kg, kbe = jax.random.split(key, 5)
    x = jax.random.normal(kx, (N, C_in, H, W), jnp.float32)
    weight = jax.random.normal(kw, (C_out, C_in, 3, 3), jnp.float32) * 0.1
    bias = jax.random.normal(kb, (C_out,), jnp.float32) * 0.1
    gamma = 1.0 + 0.1 * jax.random.normal(kg, (C_out,), jnp.float32)
    beta = 0.1 * jax.random.normal(kbe, (C_out,), jnp.float32)

    out = block_forward(x, weight, bias, gamma, beta, groups=groups)
    out = jax.block_until_ready(out)

    ref = block_reference(x, weight, bias, gamma, beta, groups=groups)
    assert out.shape == (N, C_out, H, W), out.shape
    assert jnp.allclose(out, ref, atol=1e-4, rtol=1e-4), \
        float(jnp.max(jnp.abs(out - ref)))

    print("KERNEL_OK")
</pallas_src>

<mosaic_0001>
module attributes {stable_mosaic.version = 11 : i64} {
  func.func @_ws_kernel(%arg0: memref<36x8xf32, #tpu.memory_space<vmem>>, %arg1: memref<128x128xf32, #tpu.memory_space<vmem>>) attributes {dimension_semantics = [], scalar_prefetch = 0 : i64, scratch_operands = 0 : i64, tpu.core_type = #tpu.core_type<tc>} {
    %c0 = arith.constant 0 : index
    %c0_0 = arith.constant 0 : index
    %0 = vector.load %arg0[%c0, %c0_0] : memref<36x8xf32, #tpu.memory_space<vmem>>, vector<36x8xf32>
    %cst = arith.constant dense<0.000000e+00> : vector<8xf32>
    %1 = vector.multi_reduction <add>, %0, %cst [0] : vector<36x8xf32> to vector<8xf32>
    %2 = vector.shape_cast %1 : vector<8xf32> to vector<1x8xf32>
    %cst_1 = arith.constant 3.600000e+01 : f32
    %3 = vector.broadcast %cst_1 : f32 to vector<1x8xf32>
    %4 = arith.divf %2, %3 : vector<1x8xf32>
    %5 = vector.broadcast %4 : vector<1x8xf32> to vector<36x8xf32>
    %6 = arith.subf %0, %5 : vector<36x8xf32>
    %7 = arith.mulf %6, %6 : vector<36x8xf32>
    %cst_2 = arith.constant dense<0.000000e+00> : vector<8xf32>
    %8 = vector.multi_reduction <add>, %7, %cst_2 [0] : vector<36x8xf32> to vector<8xf32>
    %9 = vector.shape_cast %8 : vector<8xf32> to vector<1x8xf32>
    %cst_3 = arith.constant 3.600000e+01 : f32
    %10 = vector.broadcast %cst_3 : f32 to vector<1x8xf32>
    %11 = arith.divf %9, %10 : vector<1x8xf32>
    %12 = vector.broadcast %4 : vector<1x8xf32> to vector<36x8xf32>
    %13 = arith.subf %0, %12 : vector<36x8xf32>
    %cst_4 = arith.constant 9.99999974E-6 : f32
    %14 = vector.broadcast %cst_4 : f32 to vector<1x8xf32>
    %15 = arith.addf %11, %14 : vector<1x8xf32>
    %16 = math.rsqrt %15 : vector<1x8xf32>
    %17 = vector.broadcast %16 : vector<1x8xf32> to vector<36x8xf32>
    %18 = arith.mulf %13, %17 : vector<36x8xf32>
    %cst_5 = arith.constant 0.000000e+00 : f32
    %19 = vector.broadcast %cst_5 : f32 to vector<36x120xf32>
    %20 = tpu.concatenate %18, %19 in 1 : vector<36x8xf32>, vector<36x120xf32> -> vector<36x128xf32>
    %cst_6 = arith.constant 0.000000e+00 : f32
    %21 = vector.broadcast %cst_6 : f32 to vector<92x128xf32>
    %22 = tpu.concatenate %20, %21 in 0 : vector<36x128xf32>, vector<92x128xf32> -> vector<128x128xf32>
    %c0_7 = arith.constant 0 : index
    %c0_8 = arith.constant 0 : index
    %23 = vector.load %arg1[%c0_7, %c0_8] : memref<128x128xf32, #tpu.memory_space<vmem>>, vector<128x128xf32>
    tpu.vector_store %arg1[%c0_7, %c0_8], %22 {strides = array<i32>} : memref<128x128xf32, #tpu.memory_space<vmem>>, vector<128x128xf32>,
    return
  }
}

</mosaic_0001>

<bundles_post_ra>
// kernel: tpu_custom_call.1
= control target key start
LH: loop header
LB: loop body
LE: loop exit
PB: predicated region body
PF: predicated region fallthrough
CT: control target
= control target key end

     0   :  { %vm14_vm0 = vcmask 64512   ;;  %vm22_vm1 = vcmask 60416   ;;  %s180_s0 = inlined_call_operand.vmem [shape: f32[36,8], index: 0, kind: input, shape index: {}]   ;;  %s181_s1 = inlined_call_operand.hbm [shape: f32[128,128], index: 1, kind: output, shape index: {}]  }
   0x1   :  { %v9_v0 = vld [vmem:[%s180_s0] sm:$0xff]  ;;  %v10_v1 = vld [vmem:[%s180_s0 + $0x8] sm:$0xff]  ;;  %v11_v2 = vld [vmem:[%s180_s0 + $0x10] sm:$0xff] }
   0x2   :  { %v12_v3 = vld [vmem:[%s180_s0 + $0x18] sm:$0xff]  ;;  %v15_v4 = vsel %vm14_vm0, %v9_v0, 0.0  ;;  %v16_v5 = vsel %vm14_vm0, %v10_v1, 0.0  ;;  %v18_v6 = vsel %vm14_vm0, %v11_v2, 0.0  ;;  %v13_v7 = vld [vmem:[%s180_s0 + $0x20] sm:$0xf] }
   0x3   :  { %v17_v8 = vadd.f32 %v16_v5, %v15_v4 }
   0x4   :  { %6 = vsyncpa [#allocation3], 0  ;;  %v20_v9 = vsel %vm14_vm0, %v12_v3, 0.0  ;;  %v133_v10 = vmov 0.0   ;;  %v23_v12 = vsel %vm22_vm1, %v13_v7, 0.0  ;;  %s134_s0 = smov [#allocation2]  }
   0x5   :  { %78 = vst [vmem:[#allocation2 + $0x28] sm:$0xff] %v133_v10  ;;  %79 = vst [vmem:[#allocation2 + $0x30] sm:$0xff] %v133_v10  ;;  %v19_v11 = vadd.f32 %v18_v6, %v17_v8  ;;  %s94_s16 = sshll.u32 %s134_s0, 4  ;;  %vm71_vm2 = vcmask 1043456   ;;  %s95_s16 = int_to_ptr.vmem [resolvable:$true] %s94_s16 }
   0x6   :  { %80 = vst [vmem:[#allocation2 + $0x38] sm:$0xff] %v133_v10  ;;  %81 = vst [vmem:[#allocation2 + $0x40] sm:$0xff] %v133_v10  ;;  %s111_s17 = scalar_lea.vmem %s95_s16, 2048  ;;  %p116_p1 = scmp.lt.s32.totalorder %s95_s16, %s95_s16 }
   0x7   :  { %82 = vst [vmem:[#allocation2 + $0x48] sm:$0xff] %v133_v10  ;;  %83 = vst [vmem:[#allocation2 + $0x50] sm:$0xff] %v133_v10  ;;  %v21_v13 = vadd.f32 %v20_v9, %v19_v11  ;;  %p112_p0 = scmp.ne.s32.totalorder %s95_s16, %s111_s17  ;;  %p117_p2 = scmp.lt.s32.totalorder %s111_s17, %s111_s17 }
   0x8   :  { %84 = vst [vmem:[#allocation2 + $0x58] sm:$0xff] %v133_v10  ;;  %85 = vst [vmem:[#allocation2 + $0x60] sm:$0xff] %v133_v10 }
   0x9   :  { %86 = vst [vmem:[#allocation2 + $0x68] sm:$0xff] %v133_v10  ;;  %87 = vst [vmem:[#allocation2 + $0x70] sm:$0xff] %v133_v10  ;;  %v24_v14 = vadd.f32 %v23_v12, %v21_v13  ;;  %p118_p3 = por %p117_p2, %p116_p1 }
   0xa   :  { %88 = vst [vmem:[#allocation2 + $0x78] sm:$0xff] %v133_v10 }
   0xb   :  { %v25_v15 = vrot.slane %v24_v14, 4  ;;  %p119_p4 = pnand %p118_p3, %p112_p0 }
   0xd   :  { %v26_v16 = vadd.f32 %v25_v15, %v24_v14 }
   0xf   :  { %v27_v17 = vrot.slane %v26_v16, 2 }
  0x11   :  { %v28_v18 = vadd.f32 %v27_v17, %v26_v16 }
  0x13   :  { %v29_v19 = vrot.slane %v28_v18, 1 }
  0x15   :  { %v30_v20 = vadd.f32 %v29_v19, %v28_v18 }
  0x17   :  { %v32_v21 = vmul.f32 0.027777778, %v30_v20 }
  0x19   :  { %v33_v22 = vsub.f32 %v9_v0, %v32_v21  ;;  %v34_v23 = vsub.f32 %v10_v1, %v32_v21  ;;  %v35_v24 = vsub.f32 %v11_v2, %v32_v21  ;;  %v36_v25 = vsub.f32 %v12_v3, %v32_v21 }
  0x1a   :  { %v37_v26 = vsub.f32 %v13_v7, %v32_v21 }
  0x1b   :  { %v38_v27 = vmul.f32 %v33_v22, %v33_v22  ;;  %v39_v28 = vmul.f32 %v34_v23, %v34_v23  ;;  %v40_v29 = vmul.f32 %v35_v24, %v35_v24  ;;  %v41_v30 = vmul.f32 %v36_v25, %v36_v25 }
  0x1c   :  { %v42_v31 = vmul.f32 %v37_v26, %v37_v26 }
  0x1d   :  { %v43_v32 = vsel %vm14_vm0, %v38_v27, 0.0  ;;  %v44_v33 = vsel %vm14_vm0, %v39_v28, 0.0  ;;  %v46_v34 = vsel %vm14_vm0, %v40_v29, 0.0  ;;  %v48_v36 = vsel %vm14_vm0, %v41_v30, 0.0 }
  0x1e   :  { %v45_v35 = vadd.f32 %v44_v33, %v43_v32  ;;  %v50_v38 = vsel %vm22_vm1, %v42_v31, 0.0 }
  0x20   :  { %v47_v37 = vadd.f32 %v46_v34, %v45_v35 }
  0x22   :  { %v49_v39 = vadd.f32 %v48_v36, %v47_v37 }
  0x24   :  { %v51_v40 = vadd.f32 %v50_v38, %v49_v39 }
  0x26   :  { %v52_v41 = vrot.slane %v51_v40, 4 }
  0x28   :  { %v53_v42 = vadd.f32 %v52_v41, %v51_v40 }
  0x2a   :  { %v54_v43 = vrot.slane %v53_v42, 2 }
  0x2c   :  { %v55_v44 = vadd.f32 %v54_v43, %v53_v42 }
  0x2e   :  { %v56_v45 = vrot.slane %v55_v44, 1 }
  0x30   :  { %v57_v46 = vadd.f32 %v56_v45, %v55_v44 }
  0x32   :  { %v58_v47 = vmul.f32 0.027777778, %v57_v46 }
  0x34   :  { %v59_v48 = vadd.f32 1e-05, %v58_v47 }
  0x36   :  { %109 = vrsqrt.f32 %v59_v48 }
  0x43   :  { %v110_v49 = vpop.eup %109 }
  0x44   :  { %v61_v50 = vmul.f32 %v110_v49, %v33_v22  ;;  %v62_v51 = vmul.f32 %v110_v49, %v34_v23  ;;  %v63_v52 = vmul.f32 %v110_v49, %v35_v24  ;;  %v64_v53 = vmul.f32 %v110_v49, %v36_v25 }
  0x45   :  { %v65_v54 = vmul.f32 %v110_v49, %v37_v26 }
  0x46   :  { %v66_v55 = vsel %vm14_vm0, %v61_v50, 0.0  ;;  %v67_v56 = vsel %vm14_vm0, %v62_v51, 0.0  ;;  %v68_v57 = vsel %vm14_vm0, %v63_v52, 0.0  ;;  %v69_v58 = vsel %vm14_vm0, %v64_v53, 0.0 }
  0x47   :  { %73 = vst [vmem:[#allocation2] sm:$0xff] %v66_v55  ;;  %74 = vst [vmem:[#allocation2 + $0x8] sm:$0xff] %v67_v56  ;;  %v70_v59 = vsel %vm14_vm0, %v65_v54, 0.0 }
  0x48   :  { %75 = vst [vmem:[#allocation2 + $0x10] sm:$0xff] %v68_v57  ;;  %76 = vst [vmem:[#allocation2 + $0x18] sm:$0xff] %v69_v58  ;;  %v72_v60 = vsel %vm71_vm2, %v70_v59, 0.0 }
  0x49   :  { %77 = vst [vmem:[#allocation2 + $0x20] sm:$0xff] %v72_v60 }
  0x4a   :  { %122 = shalt.err (!%p119_p4)
}
  0x4b   :  { %s135_s18 = smov 128   ;;  %s136_s19 = smov 8  }
  0x4c   :  { %100 = dma.vmem_to_hbm [thread:$0]  %s95_s16, 2048, %s181_s1, [#allocation3], %s135_s18, %s135_s18, %s136_s19  }
  0x4d   :  { %131 = dma.done.wait [#allocation3], 2048  }
  0x4e   :  { %132 = vsyncadd [#allocation3], 4294965248 }
  0x4f   :  { %104 = vsyncpa [#allocation3], 1 }

</bundles_post_ra>
